<compile_context>
chip_gen: v7x
topology: tpu7x:2x2x1
jax: 0.10.0
libtpu: 0.0.40
codegen_flags: <defaults>
</compile_context>

<pallas_src>
import functools

import jax
import jax.numpy as jnp
from jax.experimental import pallas as pl
from jax.experimental.pallas import tpu as pltpu


def _round_up(x, m):
    return (x + m - 1) // m * m


def reward_kernel(s_ref, a_ref, w1s_ref, w1a_ref, b1_ref, w2_ref, b2_ref,
                  out_ref):
    mm_dt = w1s_ref.dtype                       # matmul dtype (f32 or bf16)

    s = s_ref[...].astype(mm_dt)                # [tb, S]
    a = a_ref[...].astype(mm_dt)                # [tb, A]

    # fc1 on the implicit concat: relu(s @ W1_s + a @ W1_a + b1)   -> [tb, H]
    h = (jnp.dot(s, w1s_ref[...], preferred_element_type=jnp.float32)
         + jnp.dot(a, w1a_ref[...], preferred_element_type=jnp.float32)
         + b1_ref[...])
    h = jnp.maximum(h, 0.0)

    # fc2: h @ W2 + b2   -> [tb, 1]
    r = (jnp.dot(h.astype(mm_dt), w2_ref[...],
                 preferred_element_type=jnp.float32)
         + b2_ref[...])

    out_ref[...] = r.astype(out_ref.dtype)


@functools.partial(jax.jit, static_argnames=("block_b",))
def reward_prediction_forward(s, a, w1_s, w1_a, b1, w2, b2, *, block_b=512):
    """relu(cat([s,a]) @ W1 + b1) @ W2 + b2, batch-tiled Pallas kernel."""
    B, S = s.shape
    A = a.shape[1]
    H = w1_s.shape[1]

    # Batch tile: multiple of 8 (sublane), capped so small batches stay 1 step.
    tb = min(block_b, _round_up(B, 8))
    Bp = _round_up(B, tb)
    if Bp != B:
        pad = ((0, Bp - B), (0, 0))
        s = jnp.pad(s, pad)
        a = jnp.pad(a, pad)

    grid = (Bp // tb,)

    batch_spec = lambda cols: pl.BlockSpec((tb, cols), lambda i: (i, 0))
    resident = lambda shape: pl.BlockSpec(shape, lambda i: (0, 0))

    out = pl.pallas_call(
        reward_kernel,
        out_shape=jax.ShapeDtypeStruct((Bp, 1), jnp.float32),
        grid=grid,
        in_specs=[
            batch_spec(S),          # s        [tb, S]
            batch_spec(A),          # a        [tb, A]
            resident((S, H)),       # W1_s     (stays resident across tiles)
            resident((A, H)),       # W1_a
            resident((1, H)),       # b1
            resident((H, 1)),       # W2
            resident((1, 1)),       # b2
        ],
        out_specs=batch_spec(1),    # reward   [tb, 1]
        compiler_params=pltpu.CompilerParams(
            # Parallel batch axis -> shardable across v7x's 2 TensorCores.
            dimension_semantics=("parallel",)),
    )(s, a, w1_s, w1_a, b1, w2, b2)

    return out[:B]


def init_params(key, state_dim, action_dim, hidden_dim, *, dtype=jnp.float32):
    """PyTorch-style Linear init U(-1/sqrt(fan_in), +1/sqrt(fan_in)).

    Weights are stored transposed ([in, out]) and fc1's weight is pre-split
    along the input axis into the state / action halves.
    """
    k1, k2, k3, k4 = jax.random.split(key, 4)
    in1 = state_dim + action_dim

    bound1 = 1.0 / jnp.sqrt(jnp.float32(in1))
    w1 = jax.random.uniform(k1, (in1, hidden_dim), jnp.float32, -bound1, bound1)
    b1 = jax.random.uniform(k2, (1, hidden_dim), jnp.float32, -bound1, bound1)

    bound2 = 1.0 / jnp.sqrt(jnp.float32(hidden_dim))
    w2 = jax.random.uniform(k3, (hidden_dim, 1), jnp.float32, -bound2, bound2)
    b2 = jax.random.uniform(k4, (1, 1), jnp.float32, -bound2, bound2)

    w1_s = w1[:state_dim].astype(dtype)
    w1_a = w1[state_dim:].astype(dtype)
    return w1_s, w1_a, b1, w2.astype(dtype), b2, w1  # w1 (f32) kept for ref


if __name__ == "__main__":
    key = jax.random.PRNGKey(0)
    k_param, k_s, k_a = jax.random.split(key, 3)

    batch = 8
    state_dim = 12
    action_dim = 4
    hidden_dim = 32

    s = jax.random.normal(k_s, (batch, state_dim), jnp.float32)
    a = jax.random.normal(k_a, (batch, action_dim), jnp.float32)

    # ---- f32 matmul path (exact check against the pure-JAX reference) ----
    w1_s, w1_a, b1, w2, b2, w1_full = init_params(
        k_param, state_dim, action_dim, hidden_dim, dtype=jnp.float32)

    r = reward_prediction_forward(s, a, w1_s, w1_a, b1, w2, b2)
    jax.block_until_ready(r)

    x = jnp.concatenate([s, a], axis=-1)
    h_ref = jnp.maximum(x @ w1_full + b1, 0.0)
    r_ref = h_ref @ w2 + b2

    assert r.shape == (batch, 1)
    assert jnp.allclose(r, r_ref, atol=1e-5), float(jnp.max(jnp.abs(r - r_ref)))

    # ---- bf16 matmul path (perf-review item for v6e/v7x MXU; f32 accumulate) ----
    w1_s_bf, w1_a_bf, b1_bf, w2_bf, b2_bf, _ = init_params(
        k_param, state_dim, action_dim, hidden_dim, dtype=jnp.bfloat16)
    r_bf16 = reward_prediction_forward(s, a, w1_s_bf, w1_a_bf, b1_bf,
                                       w2_bf, b2_bf)
    jax.block_until_ready(r_bf16)
    assert r_bf16.shape == (batch, 1)
    assert jnp.allclose(r_bf16, r_ref, atol=1e-1, rtol=1e-1)

    # ---- odd batch size exercises the padding / tiling path ----
    r_odd = reward_prediction_forward(s[:5], a[:5], w1_s, w1_a, b1, w2, b2)
    jax.block_until_ready(r_odd)
    assert r_odd.shape == (5, 1)
    assert jnp.allclose(r_odd, r_ref[:5], atol=1e-5)

    print("KERNEL_OK")
</pallas_src>

<mosaic_0001>
module attributes {stable_mosaic.version = 11 : i64} {
  func.func @reward_kernel(%arg0: i32, %arg1: memref<8x12xf32, #tpu.memory_space<vmem>>, %arg2: memref<8x4xf32, #tpu.memory_space<vmem>>, %arg3: memref<12x32xf32, #tpu.memory_space<vmem>>, %arg4: memref<4x32xf32, #tpu.memory_space<vmem>>, %arg5: memref<1x32xf32, #tpu.memory_space<vmem>>, %arg6: memref<32x1xf32, #tpu.memory_space<vmem>>, %arg7: memref<1x1xf32, #tpu.memory_space<vmem>>, %arg8: memref<8x1xf32, #tpu.memory_space<vmem>>) attributes {dimension_semantics = [#tpu.dimension_semantics<parallel>], iteration_bounds = array<i64: 1>, scalar_prefetch = 0 : i64, scratch_operands = 0 : i64, tpu.core_type = #tpu.core_type<tc>, window_params = [{transform_indices = @transform_0, window_bounds = array<i64: 8, 12>}, {transform_indices = @transform_1, window_bounds = array<i64: 8, 4>}, {pipeline_mode = #tpu.pipeline_mode<synchronous>, transform_indices = @transform_2, window_bounds = array<i64: 12, 32>}, {pipeline_mode = #tpu.pipeline_mode<synchronous>, transform_indices = @transform_3, window_bounds = array<i64: 4, 32>}, {pipeline_mode = #tpu.pipeline_mode<synchronous>, transform_indices = @transform_4, window_bounds = array<i64: 1, 32>}, {pipeline_mode = #tpu.pipeline_mode<synchronous>, transform_indices = @transform_5, window_bounds = array<i64: 32, 1>}, {pipeline_mode = #tpu.pipeline_mode<synchronous>, transform_indices = @transform_6, window_bounds = array<i64: 1, 1>}, {transform_indices = @transform_7, window_bounds = array<i64: 8, 1>}]} {
    %c0 = arith.constant 0 : index
    %c0_0 = arith.constant 0 : index
    %0 = vector.load %arg1[%c0, %c0_0] : memref<8x12xf32, #tpu.memory_space<vmem>>, vector<8x12xf32>
    %c0_1 = arith.constant 0 : index
    %c0_2 = arith.constant 0 : index
    %1 = vector.load %arg2[%c0_1, %c0_2] : memref<8x4xf32, #tpu.memory_space<vmem>>, vector<8x4xf32>
    %c0_3 = arith.constant 0 : index
    %c0_4 = arith.constant 0 : index
    %2 = vector.load %arg3[%c0_3, %c0_4] : memref<12x32xf32, #tpu.memory_space<vmem>>, vector<12x32xf32>
    %cst = arith.constant dense<0.000000e+00> : vector<8x32xf32>
    %3 = tpu.matmul %0, %2, %cst {dimension_numbers = #tpu.dot_dimension_numbers<[1], [0], [0], [1], [0, 0, 1, 1], [], []>} : vector<8x12xf32>, vector<12x32xf32>, vector<8x32xf32> -> vector<8x32xf32>
    %c0_5 = arith.constant 0 : index
    %c0_6 = arith.constant 0 : index
    %4 = vector.load %arg4[%c0_5, %c0_6] : memref<4x32xf32, #tpu.memory_space<vmem>>, vector<4x32xf32>
    %cst_7 = arith.constant dense<0.000000e+00> : vector<8x32xf32>
    %5 = tpu.matmul %1, %4, %cst_7 {dimension_numbers = #tpu.dot_dimension_numbers<[1], [0], [0], [1], [0, 0, 1, 1], [], []>} : vector<8x4xf32>, vector<4x32xf32>, vector<8x32xf32> -> vector<8x32xf32>
    %6 = arith.addf %3, %5 : vector<8x32xf32>
    %c0_8 = arith.constant 0 : index
    %c0_9 = arith.constant 0 : index
    %7 = vector.load %arg5[%c0_8, %c0_9] : memref<1x32xf32, #tpu.memory_space<vmem>>, vector<1x32xf32>
    %8 = vector.broadcast %7 : vector<1x32xf32> to vector<8x32xf32>
    %9 = arith.addf %6, %8 : vector<8x32xf32>
    %cst_10 = arith.constant 0.000000e+00 : f32
    %10 = vector.broadcast %cst_10 : f32 to vector<8x32xf32>
    %11 = arith.maximumf %9, %10 : vector<8x32xf32>
    %c0_11 = arith.constant 0 : index
    %c0_12 = arith.constant 0 : index
    %12 = vector.load %arg6[%c0_11, %c0_12] : memref<32x1xf32, #tpu.memory_space<vmem>>, vector<32x1xf32>
    %cst_13 = arith.constant dense<0.000000e+00> : vector<8x1xf32>
    %13 = tpu.matmul %11, %12, %cst_13 {dimension_numbers = #tpu.dot_dimension_numbers<[1], [0], [0], [1], [0, 0, 1, 1], [], []>} : vector<8x32xf32>, vector<32x1xf32>, vector<8x1xf32> -> vector<8x1xf32>
    %c0_14 = arith.constant 0 : index
    %c0_15 = arith.constant 0 : index
    %14 = vector.load %arg7[%c0_14, %c0_15] : memref<1x1xf32, #tpu.memory_space<vmem>>, vector<1x1xf32>
    %15 = vector.broadcast %14 : vector<1x1xf32> to vector<8x1xf32>
    %16 = arith.addf %13, %15 : vector<8x1xf32>
    %c0_16 = arith.constant 0 : index
    %c0_17 = arith.constant 0 : index
    %17 = vector.load %arg8[%c0_16, %c0_17] : memref<8x1xf32, #tpu.memory_space<vmem>>, vector<8x1xf32>
    tpu.vector_store %arg8[%c0_16, %c0_17], %16 {strides = array<i32>} : memref<8x1xf32, #tpu.memory_space<vmem>>, vector<8x1xf32>,
    return
  }
  func.func @transform_0(%arg0: i32) -> (i32, i32) {
    %c0_i32 = arith.constant 0 : i32
    %c0_i32_0 = arith.constant 0 : i32
    return %arg0, %c0_i32 : i32, i32
  }
  func.func @transform_1(%arg0: i32) -> (i32, i32) {
    %c0_i32 = arith.constant 0 : i32
    %c0_i32_0 = arith.constant 0 : i32
    return %arg0, %c0_i32 : i32, i32
  }
  func.func @transform_2(%arg0: i32) -> (i32, i32) {
    %c0_i32 = arith.constant 0 : i32
    %c0_i32_0 = arith.constant 0 : i32
    %c0_i32_1 = arith.constant 0 : i32
    return %c0_i32, %c0_i32_0 : i32, i32
  }
  func.func @transform_3(%arg0: i32) -> (i32, i32) {
    %c0_i32 = arith.constant 0 : i32
    %c0_i32_0 = arith.constant 0 : i32
    %c0_i32_1 = arith.constant 0 : i32
    return %c0_i32, %c0_i32_0 : i32, i32
  }
  func.func @transform_4(%arg0: i32) -> (i32, i32) {
    %c0_i32 = arith.constant 0 : i32
    %c0_i32_0 = arith.constant 0 : i32
    %c0_i32_1 = arith.constant 0 : i32
    return %c0_i32, %c0_i32_0 : i32, i32
  }
  func.func @transform_5(%arg0: i32) -> (i32, i32) {
    %c0_i32 = arith.constant 0 : i32
    %c0_i32_0 = arith.constant 0 : i32
    %c0_i32_1 = arith.constant 0 : i32
    return %c0_i32, %c0_i32_0 : i32, i32
  }
  func.func @transform_6(%arg0: i32) -> (i32, i32) {
    %c0_i32 = arith.constant 0 : i32
    %c0_i32_0 = arith.constant 0 : i32
    %c0_i32_1 = arith.constant 0 : i32
    return %c0_i32, %c0_i32_0 : i32, i32
  }
  func.func @transform_7(%arg0: i32) -> (i32, i32) {
    %c0_i32 = arith.constant 0 : i32
    %c0_i32_0 = arith.constant 0 : i32
    return %arg0, %c0_i32 : i32, i32
  }
}

</mosaic_0001>

<bundles_post_ra>
// kernel: reward_prediction_forward.1
= control target key start
LH: loop header
LB: loop body
LE: loop exit
PB: predicated region body
PF: predicated region fallthrough
CT: control target
= control target key end

     0   :  { %vm37_vm0 = vcmask 1043456   ;;  %v342_v0 = vmov 0.0   ;;  %vm343_vm1 = vmmov 0   ;;  %vm33_vm2 = vcmask 31744   ;;  %s425_s3 = inlined_call_operand.vmem [shape: f32[4,32], index: 3, kind: input, shape index: {}]   ;;  %s426_s1 = inlined_call_operand.vmem [shape: f32[8,4], index: 1, kind: input, shape index: {}]   ;;  %s427_s2 = inlined_call_operand.vmem [shape: f32[12,32], index: 2, kind: input, shape index: {}]   ;;  %s428_s0 = inlined_call_operand.vmem [shape: f32[8,12], index: 0, kind: input, shape index: {}]   ;;  %s429_s5 = inlined_call_operand.vmem [shape: f32[32,1], index: 5, kind: input, shape index: {}]   ;;  %s430_s6 = inlined_call_operand.<no memory space> [shape: f32[1,1], index: 6, kind: input, shape index: {}]   ;;  %s431_s4 = inlined_call_operand.vmem [shape: f32[1,32], index: 4, kind: input, shape index: {}]   ;;  %s432_s7 = inlined_call_operand.vmem [shape: f32[8,1], index: 7, kind: output, shape index: {}]  }
   0x1   :  { %305 = vmatprep.subr.mxu1 %v342_v0  ;;  %v32_v1 = vld [vmem:[%s425_s3] sm:$0xf]  ;;  %307 = vmatprep.mubr.msk.f32.mxu1 %vm343_vm1, %v342_v0  ;;  %vm344_vm3 = vmmov 1   ;;  %v31_v4 = vld [vmem:[%s427_s2 + $0x8] sm:$0xf]  ;;  %v345_v5 = vmov 0.0|0.0   ;;  %v12_v14 = vstv %s430_s6 }
   0x2   :  { %v29_v2 = vld [vmem:[%s426_s1] sm:$0xff]  ;;  %306 = vmatpush3.msk.msra.mxu1 %vm37_vm0, %v32_v1  ;;  %vm330_vm4 = vmpackc.low %vm37_vm0, %vm344_vm3  ;;  %332 = vmatprep.subr.bf16.mxu0 %v345_v5  ;;  %vm111_vm5 = vcmask 97280   ;;  %v198_v9 = vld [vmem:[%s429_s5 + $0x8] sm:$0xff]  ;;  %13 = vst [vmem:[#allocation2] sm:$0x1] %v12_v14  ;;  %vm208_vm6 = vcmask 261120  }
   0x3   :  { %v30_v3 = vld [vmem:[%s427_s2] sm:$0xff]  ;;  %308 = vmatmul.mubr.msk.f32.vlgmr.msra.gmra.mrb[0].mxu1 %vm33_vm2, %v29_v2  ;;  %328 = vmatprep.subr.bf16.mxu1 %v345_v5  ;;  %v199_v11 = vld [vmem:[%s429_s5 + $0x10] sm:$0xff]  ;;  %v200_v12 = vld [vmem:[%s429_s5 + $0x18] sm:$0xff]  ;;  %vm282_vm7 = vcmask 7168  }
   0x4   :  { %v329_v6 = vpack.c.bf16 %v31_v4, %v30_v3  ;;  %314 = vmatprep.mubr.msk.f32.mxu1 %vm343_vm1, %v342_v0  ;;  %325 = vmatprep.mubr.msk.f32.mxu0 %vm343_vm1, %v342_v0  ;;  %v28_v7 = vld [vmem:[%s428_s0] sm:$0xff]  ;;  %v336_v13 = vpack.c.bf16 %v200_v12, %v199_v11 }
   0x5   :  { %v197_v8 = vld [vmem:[%s429_s5] sm:$0xff] }
   0x6   :  { %331 = vmatpush3.bf16.msk.msra.mxu1 %vm330_vm4, %v329_v6  ;;  %v333_v10 = vpack.c.bf16 %v198_v9, %v197_v8  ;;  %v292_v18 = vld [vmem:[%s431_s4] ss:$0 sm:$0xff] }
   0x8   :  { %334 = vmatpush3.bf16.msra.mxu0 %v333_v10 }
   0x9   :  { %315 = vmatmul.mubr.msk.f32.vlgmr.msra.gmra.mrb[2].mxu1 %vm111_vm5, %v28_v7  ;;  %335 = vmatprep.subr.bf16.mxu0 %v345_v5  ;;  %v293_v23 = vld [vmem:[#allocation2] ss:$0 sm:$0xff] }
   0xc   :  { %337 = vmatpush3.bf16.msra.mxu0 %v336_v13 }
  0xd6   :  { %v107_v15 = vpop.f32.mrb[0].mxu1 }
  0xd7   :  { %v309_v16 = vpop.f32.mrb[1].mxu1 }
  0xdc   :  { %v184_v17 = vpop.f32.mrb[2].mxu1 }
  0xdd   :  { %v185_v19 = vadd.f32 %v184_v17, %v107_v15  ;;  %v316_v20 = vpop.f32.mrb[3].mxu1 }
  0xdf   :  { %v195_v21 = vadd.f32 %v292_v18, %v185_v19 }
  0xe1   :  { %v196_v22 = vmax.f32 %v195_v21, 0.0 }
  0xe3   :  { %326 = vmatmul.mubr.msk.f32.vlgmr.msra.gmra.mrb[0].mxu0 %vm208_vm6, %v196_v22 }
 0x1b6   :  { %v278_v24 = vpop.f32.mrb[0].mxu0 }
 0x1b7   :  { %v279_v25 = vadd.f32 %v293_v23, %v278_v24  ;;  %v327_v26 = vpop.f32.mrb[1].mxu0 }
 0x1b9   :  { %283 = vst.msk [vmem:[%s432_s7] sm:$0xff] %vm282_vm7, %v279_v25 }

</bundles_post_ra>
